<compile_context>
chip_gen: v7x
topology: tpu7x:2x2x1
jax: 0.10.0
libtpu: 0.0.40
codegen_flags: <defaults>
</compile_context>

<pallas_src>
import functools

import jax
import jax.numpy as jnp
from jax.experimental import pallas as pl
from jax.experimental.pallas import tpu as pltpu

_LANE = 128


def _make_divisible(v, divisor, min_value=None):
    if min_value is None:
        min_value = divisor
    new_v = max(min_value, int(v + divisor / 2) // divisor * divisor)
    if new_v < 0.9 * v:
        new_v += divisor
    return new_v


# --------------------------------------------------------------------------
# Fused single-pass kernel: squeeze + excite + rescale on one (bt, ., .) tile.
# --------------------------------------------------------------------------
def _se_fused_kernel(x_ref, w1_ref, b1_ref, w2_ref, b2_ref, o_ref, *,
                     inv_hw, channels_last):
    # x_ref: (bt, C, HW[,pad]) or (bt, HW, C) when channels_last.
    reduce_axis = 1 if channels_last else 2

    # Squeeze: fp32-accumulated global average pool (no fp32 copy of the slab).
    y = jnp.sum(x_ref[...], axis=reduce_axis, dtype=jnp.float32) * jnp.float32(inv_hw)

    # Excitation: fc1 -> Mish -> fc2 -> Sigmoid (tiny, fp32).
    z1 = jnp.dot(y, w1_ref[...], preferred_element_type=jnp.float32) + b1_ref[...]
    z1 = z1 * jnp.tanh(jax.nn.softplus(z1))          # Mish (overflow-safe)
    z2 = jnp.dot(z1, w2_ref[...], preferred_element_type=jnp.float32) + b2_ref[...]
    s = jax.nn.sigmoid(z2).astype(x_ref.dtype)       # (bt, C)

    scale = s[:, None, :] if channels_last else s[:, :, None]
    # Re-read x_ref for the rescale: VMEM re-load is ~free and keeps the slab's
    # vreg live range from spanning the whole excitation chain.
    o_ref[...] = (x_ref[...] * scale).astype(o_ref.dtype)


# --------------------------------------------------------------------------
# Two-pass fallback kernels (single batch row larger than the VMEM budget).
# --------------------------------------------------------------------------
def _pool_excite_kernel(x_ref, w1_ref, b1_ref, w2_ref, b2_ref, s_ref, acc_ref,
                        *, inv_hw):
    # grid = (B, n_hw_tiles); x_ref: (1, C, hw_t); s_ref: (1, C, 1) f32.
    j = pl.program_id(1)

    @pl.when(j == 0)
    def _():
        acc_ref[...] = jnp.zeros_like(acc_ref)

    acc_ref[...] += jnp.sum(x_ref[...], axis=-1, dtype=jnp.float32)

    @pl.when(j == pl.num_programs(1) - 1)
    def _():
        y = acc_ref[...] * jnp.float32(inv_hw)                        # (1, C)
        z1 = jnp.dot(y, w1_ref[...], preferred_element_type=jnp.float32) + b1_ref[...]
        z1 = z1 * jnp.tanh(jax.nn.softplus(z1))
        z2 = jnp.dot(z1, w2_ref[...], preferred_element_type=jnp.float32) + b2_ref[...]
        s_ref[...] = jax.nn.sigmoid(z2)[:, :, None]                   # (1, C, 1)


def _rescale_kernel(s_ref, x_ref, o_ref):
    scale = s_ref[...].astype(x_ref.dtype)            # (1, C, 1)
    o_ref[...] = (x_ref[...] * scale).astype(o_ref.dtype)


# --------------------------------------------------------------------------
# Wrapper helpers.
# --------------------------------------------------------------------------
def _vmem_budget():
    """Generation-aware (physical VMEM, tile-data budget) in bytes."""
    try:
        cap = int(pltpu.get_tpu_info().vmem_capacity_bytes)
    except Exception:
        cap = 64 * 1024 * 1024            # conservative (v7x per-TC VMEM)
    if cap <= 64 * 1024 * 1024:
        tile_budget = 40 * 1024 * 1024    # v7x: headroom under 64 MiB physical
    else:
        tile_budget = 64 * 1024 * 1024    # v5e / v6e: 128 MiB physical
    return cap, tile_budget


def _pick_batch_tile(B, row_bytes, tile_budget_bytes, min_grid_steps):
    # Largest bt whose in+out tiles, double-buffered (4 tiles), fit the budget.
    max_bt = max(1, tile_budget_bytes // (4 * row_bytes))
    bt = min(max_bt, B)
    if B > 1:
        # Keep >= min(min_grid_steps, B) grid steps: software pipelining of
        # next-tile DMA / prev-tile writeback, and v7x 2-TC sharding.
        target_steps = min(min_grid_steps, B)
        bt = min(bt, max(1, B // target_steps))
        # ...but avoid tiny (<~1 MiB) tiles as long as we keep >= 2 steps.
        min_bt = min(max_bt, max(1, (1 << 20) // row_bytes))
        if bt < min_bt:
            bt = min(min_bt, max(1, B // 2))
    return max(1, bt)


def _vmem_limit(vmem_cap, tile_bytes, weights_bytes):
    need = 4 * tile_bytes + weights_bytes + (4 << 20)
    return int(min(vmem_cap - (8 << 20), max(32 << 20, need)))


# --------------------------------------------------------------------------
# Public entry point.
# --------------------------------------------------------------------------
def se_layer(x, w1, b1, w2, b2, *, tile_budget_bytes=None, min_grid_steps=8):
    """x: (B, C, H, W); w1: (hidden, C); b1: (hidden,); w2: (C, hidden); b2: (C,)."""
    B, C, H, W = x.shape
    hidden = w1.shape[0]
    HW = H * W
    itemsize = jnp.dtype(x.dtype).itemsize

    vmem_cap, auto_budget = _vmem_budget()
    if tile_budget_bytes is None:
        tile_budget_bytes = auto_budget

    # Pre-transpose weights so the kernel does plain row-major matmuls.
    w1_t = jnp.transpose(w1)          # (C, hidden)
    w2_t = jnp.transpose(w2)          # (hidden, C)
    b1_2d = b1.reshape(1, hidden)
    b2_2d = b2.reshape(1, C)
    weights_bytes = sum(int(a.size) * jnp.dtype(a.dtype).itemsize
                        for a in (w1_t, w2_t, b1_2d, b2_2d))

    row_bytes = C * HW * itemsize
    if 4 * row_bytes > tile_budget_bytes:
        # One batch row alone does not fit: HW-tiled two-pass fallback.
        return _se_two_pass(x, w1_t, b1_2d, w2_t, b2_2d,
                            tile_budget_bytes=tile_budget_bytes,
                            vmem_cap=vmem_cap, weights_bytes=weights_bytes)

    # ----- layout: keep the lane (last) dim a multiple of 128 -----
    channels_last = False
    hw_pad = HW
    if HW % _LANE == 0:
        x3 = x.reshape(B, C, HW)
    elif C % _LANE == 0:
        # Channels on lanes (common SE case: large C, small spatial).
        # TODO(synk): an NHWC producer could feed this layout directly and
        # skip the transpose copy.
        channels_last = True
        x3 = jnp.transpose(x, (0, 2, 3, 1)).reshape(B, HW, C)
    else:
        hw_pad = pl.cdiv(HW, _LANE) * _LANE
        x3 = jnp.pad(x.reshape(B, C, HW), ((0, 0), (0, 0), (0, hw_pad - HW)))

    row_bytes_eff = C * hw_pad * itemsize
    bt = _pick_batch_tile(B, row_bytes_eff, tile_budget_bytes, min_grid_steps)
    nb = pl.cdiv(B, bt)
    b_pad = nb * bt
    if b_pad != B:
        x3 = jnp.pad(x3, ((0, b_pad - B), (0, 0), (0, 0)))

    vmem_limit = _vmem_limit(vmem_cap, bt * row_bytes_eff, weights_bytes)
    kernel = functools.partial(_se_fused_kernel, inv_hw=1.0 / HW,
                               channels_last=channels_last)
    blk = (bt,) + x3.shape[1:]

    out = pl.pallas_call(
        kernel,
        out_shape=jax.ShapeDtypeStruct(x3.shape, x.dtype),
        grid_spec=pltpu.PrefetchScalarGridSpec(
            num_scalar_prefetch=0,
            grid=(nb,),
            in_specs=[
                pl.BlockSpec(blk, lambda i: (i, 0, 0)),
                pl.BlockSpec((C, hidden), lambda i: (0, 0)),
                pl.BlockSpec((1, hidden), lambda i: (0, 0)),
                pl.BlockSpec((hidden, C), lambda i: (0, 0)),
                pl.BlockSpec((1, C), lambda i: (0, 0)),
            ],
            out_specs=pl.BlockSpec(blk, lambda i: (i, 0, 0)),
        ),
        compiler_params=pltpu.CompilerParams(
            dimension_semantics=("parallel",),
            vmem_limit_bytes=vmem_limit),
    )(x3, w1_t, b1_2d, w2_t, b2_2d)

    out = out[:B]
    if channels_last:
        return out.reshape(B, H, W, C).transpose(0, 3, 1, 2)
    if hw_pad != HW:
        out = out[:, :, :HW]
    return out.reshape(B, C, H, W)


def _se_two_pass(x, w1_t, b1_2d, w2_t, b2_2d, *, tile_budget_bytes, vmem_cap,
                 weights_bytes):
    """Fallback for huge rows: pass 1 pools+excites over HW tiles, pass 2 rescales."""
    B, C, H, W = x.shape
    hidden = w1_t.shape[1]
    HW = H * W
    itemsize = jnp.dtype(x.dtype).itemsize

    # HW tile: lane-dense multiple of 128 fitting the budget (double-buffered).
    hw_t = max(_LANE, (tile_budget_bytes // (4 * C * itemsize)) // _LANE * _LANE)
    hw_t = min(hw_t, pl.cdiv(HW, _LANE) * _LANE)
    nhw = pl.cdiv(HW, hw_t)
    hw_pad = nhw * hw_t

    x3 = x.reshape(B, C, HW)
    if hw_pad != HW:
        x3 = jnp.pad(x3, ((0, 0), (0, 0), (0, hw_pad - HW)))

    vmem_limit = _vmem_limit(vmem_cap, C * hw_t * itemsize, weights_bytes)
    cparams = pltpu.CompilerParams(
        dimension_semantics=("parallel", "arbitrary"),
        vmem_limit_bytes=vmem_limit)

    # Pass 1: chunked fp32 pooling + excitation -> per-(b, c) sigmoid scale.
    s = pl.pallas_call(
        functools.partial(_pool_excite_kernel, inv_hw=1.0 / HW),
        out_shape=jax.ShapeDtypeStruct((B, C, 1), jnp.float32),
        grid_spec=pltpu.PrefetchScalarGridSpec(
            num_scalar_prefetch=0,
            grid=(B, nhw),
            in_specs=[
                pl.BlockSpec((1, C, hw_t), lambda i, j: (i, 0, j)),
                pl.BlockSpec((C, hidden), lambda i, j: (0, 0)),
                pl.BlockSpec((1, hidden), lambda i, j: (0, 0)),
                pl.BlockSpec((hidden, C), lambda i, j: (0, 0)),
                pl.BlockSpec((1, C), lambda i, j: (0, 0)),
            ],
            out_specs=pl.BlockSpec((1, C, 1), lambda i, j: (i, 0, 0)),
            scratch_shapes=[pltpu.VMEM((1, C), jnp.float32)],
        ),
        compiler_params=cparams,
    )(x3, w1_t, b1_2d, w2_t, b2_2d)

    # Pass 2: streamed rescale.
    out = pl.pallas_call(
        _rescale_kernel,
        out_shape=jax.ShapeDtypeStruct(x3.shape, x.dtype),
        grid_spec=pltpu.PrefetchScalarGridSpec(
            num_scalar_prefetch=0,
            grid=(B, nhw),
            in_specs=[
                pl.BlockSpec((1, C, 1), lambda i, j: (i, 0, 0)),
                pl.BlockSpec((1, C, hw_t), lambda i, j: (i, 0, j)),
            ],
            out_specs=pl.BlockSpec((1, C, hw_t), lambda i, j: (i, 0, j)),
        ),
        compiler_params=cparams,
    )(s, x3)

    if hw_pad != HW:
        out = out[:, :, :HW]
    return out.reshape(B, C, H, W)


# --------------------------------------------------------------------------
# Demo / correctness check.
# --------------------------------------------------------------------------
if __name__ == "__main__":
    reduction = 4

    def make_weights(C, key):
        hidden = _make_divisible(C // reduction, 8)
        k1, k2, k3, k4 = jax.random.split(key, 4)
        w1 = 0.1 * jax.random.normal(k1, (hidden, C), dtype=jnp.float32)
        b1 = 0.1 * jax.random.normal(k2, (hidden,), dtype=jnp.float32)
        w2 = 0.1 * jax.random.normal(k3, (C, hidden), dtype=jnp.float32)
        b2 = 0.1 * jax.random.normal(k4, (C,), dtype=jnp.float32)
        return w1, b1, w2, b2

    def reference(x, w1, b1, w2, b2):
        y = jnp.mean(x, axis=(2, 3))
        z1 = y @ w1.T + b1
        z1 = z1 * jnp.tanh(jax.nn.softplus(z1))       # Mish
        s = jax.nn.sigmoid(z1 @ w2.T + b2)
        return x * s[:, :, None, None]

    def check(shape, params, key, **kw):
        x = jax.random.normal(key, shape, dtype=jnp.float32)
        out = se_layer(x, *params, **kw)
        jax.block_until_ready(out)
        ref = reference(x, *params)
        assert out.shape == x.shape
        assert jnp.allclose(out, ref, atol=1e-5, rtol=1e-5), \
            f"mismatch vs reference for shape={shape} kwargs={kw}"

    key = jax.random.PRNGKey(0)
    kw16, kw128, kx1, kx2, kx3, kx4 = jax.random.split(key, 6)
    params16 = make_weights(16, kw16)      # SELayer(inp=16, oup=16, reduction=4)
    params128 = make_weights(128, kw128)   # SELayer(inp=128, oup=128, reduction=4)

    # Primary shape: lane-dense fused path (HW = 256 is a multiple of 128).
    check((2, 16, 16, 16), params16, kx1)
    # HW not a multiple of 128, small C -> padded-lane fused path.
    check((2, 16, 7, 7), params16, kx2)
    # HW not a multiple of 128, C multiple of 128 -> channels-last fused path.
    check((2, 128, 7, 7), params128, kx3)
    # Forced tiny tile budget -> two-pass HW-tiled fallback path.
    check((2, 16, 32, 32), params16, kx4, tile_budget_bytes=128 * 1024)

    print("KERNEL_OK")
</pallas_src>

<mosaic_0001>
module attributes {stable_mosaic.version = 11 : i64} {
  func.func @_se_fused_kernel(%arg0: i32, %arg1: memref<1x16x256xf32, #tpu.memory_space<vmem>>, %arg2: memref<16x8xf32, #tpu.memory_space<vmem>>, %arg3: memref<1x8xf32, #tpu.memory_space<vmem>>, %arg4: memref<8x16xf32, #tpu.memory_space<vmem>>, %arg5: memref<1x16xf32, #tpu.memory_space<vmem>>, %arg6: memref<1x16x256xf32, #tpu.memory_space<vmem>>) attributes {dimension_semantics = [#tpu.dimension_semantics<parallel>], iteration_bounds = array<i64: 2>, scalar_prefetch = 0 : i64, scratch_operands = 0 : i64, tpu.core_type = #tpu.core_type<tc>, window_params = [{transform_indices = @transform_0, window_bounds = array<i64: 1, 16, 256>}, {pipeline_mode = #tpu.pipeline_mode<synchronous>, transform_indices = @transform_1, window_bounds = array<i64: 16, 8>}, {pipeline_mode = #tpu.pipeline_mode<synchronous>, transform_indices = @transform_2, window_bounds = array<i64: 1, 8>}, {pipeline_mode = #tpu.pipeline_mode<synchronous>, transform_indices = @transform_3, window_bounds = array<i64: 8, 16>}, {pipeline_mode = #tpu.pipeline_mode<synchronous>, transform_indices = @transform_4, window_bounds = array<i64: 1, 16>}, {transform_indices = @transform_5, window_bounds = array<i64: 1, 16, 256>}]} {
    %c0 = arith.constant 0 : index
    %c0_0 = arith.constant 0 : index
    %c0_1 = arith.constant 0 : index
    %0 = vector.load %arg1[%c0, %c0_0, %c0_1] : memref<1x16x256xf32, #tpu.memory_space<vmem>>, vector<1x16x256xf32>
    %cst = arith.constant dense<0.000000e+00> : vector<1x16xf32>
    %1 = vector.multi_reduction <add>, %0, %cst [2] : vector<1x16x256xf32> to vector<1x16xf32>
    %cst_2 = arith.constant 3.906250e-03 : f32
    %2 = vector.broadcast %cst_2 : f32 to vector<1x16xf32>
    %3 = arith.mulf %1, %2 : vector<1x16xf32>
    %c0_3 = arith.constant 0 : index
    %c0_4 = arith.constant 0 : index
    %4 = vector.load %arg2[%c0_3, %c0_4] : memref<16x8xf32, #tpu.memory_space<vmem>>, vector<16x8xf32>
    %cst_5 = arith.constant dense<0.000000e+00> : vector<1x8xf32>
    %5 = tpu.matmul %3, %4, %cst_5 {dimension_numbers = #tpu.dot_dimension_numbers<[1], [0], [0], [1], [0, 0, 1, 1], [], []>} : vector<1x16xf32>, vector<16x8xf32>, vector<1x8xf32> -> vector<1x8xf32>
    %c0_6 = arith.constant 0 : index
    %c0_7 = arith.constant 0 : index
    %6 = vector.load %arg3[%c0_6, %c0_7] : memref<1x8xf32, #tpu.memory_space<vmem>>, vector<1x8xf32>
    %7 = arith.addf %5, %6 : vector<1x8xf32>
    %cst_8 = arith.constant 0.000000e+00 : f32
    %8 = vector.broadcast %cst_8 : f32 to vector<1x8xf32>
    %9 = arith.maximumf %7, %8 : vector<1x8xf32>
    %10 = vector.broadcast %cst_8 : f32 to vector<1x8xf32>
    %11 = arith.subf %7, %10 : vector<1x8xf32>
    %12 = arith.cmpf one, %11, %11 : vector<1x8xf32>
    %13 = vector.broadcast %cst_8 : f32 to vector<1x8xf32>
    %14 = arith.addf %7, %13 : vector<1x8xf32>
    %15 = math.absf %11 : vector<1x8xf32>
    %cst_9 = arith.constant 0.000000e+00 : f32
    %16 = vector.broadcast %cst_9 : f32 to vector<1x8xf32>
    %17 = arith.subf %16, %15 : vector<1x8xf32>
    %18 = math.exp %17 : vector<1x8xf32>
    %19 = math.log1p %18 : vector<1x8xf32>
    %20 = arith.addf %9, %19 : vector<1x8xf32>
    %21 = arith.select %12, %14, %20 : vector<1x8xi1>, vector<1x8xf32>
    %22 = math.tanh %21 : vector<1x8xf32>
    %23 = arith.mulf %7, %22 : vector<1x8xf32>
    %c0_10 = arith.constant 0 : index
    %c0_11 = arith.constant 0 : index
    %24 = vector.load %arg4[%c0_10, %c0_11] : memref<8x16xf32, #tpu.memory_space<vmem>>, vector<8x16xf32>
    %cst_12 = arith.constant dense<0.000000e+00> : vector<1x16xf32>
    %25 = tpu.matmul %23, %24, %cst_12 {dimension_numbers = #tpu.dot_dimension_numbers<[1], [0], [0], [1], [0, 0, 1, 1], [], []>} : vector<1x8xf32>, vector<8x16xf32>, vector<1x16xf32> -> vector<1x16xf32>
    %c0_13 = arith.constant 0 : index
    %c0_14 = arith.constant 0 : index
    %26 = vector.load %arg5[%c0_13, %c0_14] : memref<1x16xf32, #tpu.memory_space<vmem>>, vector<1x16xf32>
    %27 = arith.addf %25, %26 : vector<1x16xf32>
    %28 = arith.negf %27 : vector<1x16xf32>
    %29 = math.exp %28 : vector<1x16xf32>
    %cst_15 = arith.constant 1.000000e+00 : f32
    %30 = vector.broadcast %cst_15 : f32 to vector<1x16xf32>
    %31 = arith.addf %30, %29 : vector<1x16xf32>
    %32 = arith.divf %30, %31 : vector<1x16xf32>
    %33 = vector.shape_cast %32 : vector<1x16xf32> to vector<1x16x1xf32>
    %c0_16 = arith.constant 0 : index
    %c0_17 = arith.constant 0 : index
    %c0_18 = arith.constant 0 : index
    %34 = vector.load %arg1[%c0_16, %c0_17, %c0_18] : memref<1x16x256xf32, #tpu.memory_space<vmem>>, vector<1x16x256xf32>
    %35 = vector.broadcast %33 : vector<1x16x1xf32> to vector<1x16x256xf32>
    %36 = arith.mulf %34, %35 : vector<1x16x256xf32>
    %c0_19 = arith.constant 0 : index
    %c0_20 = arith.constant 0 : index
    %c0_21 = arith.constant 0 : index
    %37 = vector.load %arg6[%c0_19, %c0_20, %c0_21] : memref<1x16x256xf32, #tpu.memory_space<vmem>>, vector<1x16x256xf32>
    tpu.vector_store %arg6[%c0_19, %c0_20, %c0_21], %36 {strides = array<i32>} : memref<1x16x256xf32, #tpu.memory_space<vmem>>, vector<1x16x256xf32>,
    return
  }
  func.func @transform_0(%arg0: i32) -> (i32, i32, i32) {
    %c0_i32 = arith.constant 0 : i32
    %c0_i32_0 = arith.constant 0 : i32
    %c0_i32_1 = arith.constant 0 : i32
    return %arg0, %c0_i32, %c0_i32_0 : i32, i32, i32
  }
  func.func @transform_1(%arg0: i32) -> (i32, i32) {
    %c0_i32 = arith.constant 0 : i32
    %c0_i32_0 = arith.constant 0 : i32
    %c0_i32_1 = arith.constant 0 : i32
    return %c0_i32, %c0_i32_0 : i32, i32
  }
  func.func @transform_2(%arg0: i32) -> (i32, i32) {
    %c0_i32 = arith.constant 0 : i32
    %c0_i32_0 = arith.constant 0 : i32
    %c0_i32_1 = arith.constant 0 : i32
    return %c0_i32, %c0_i32_0 : i32, i32
  }
  func.func @transform_3(%arg0: i32) -> (i32, i32) {
    %c0_i32 = arith.constant 0 : i32
    %c0_i32_0 = arith.constant 0 : i32
    %c0_i32_1 = arith.constant 0 : i32
    return %c0_i32, %c0_i32_0 : i32, i32
  }
  func.func @transform_4(%arg0: i32) -> (i32, i32) {
    %c0_i32 = arith.constant 0 : i32
    %c0_i32_0 = arith.constant 0 : i32
    %c0_i32_1 = arith.constant 0 : i32
    return %c0_i32, %c0_i32_0 : i32, i32
  }
  func.func @transform_5(%arg0: i32) -> (i32, i32, i32) {
    %c0_i32 = arith.constant 0 : i32
    %c0_i32_0 = arith.constant 0 : i32
    %c0_i32_1 = arith.constant 0 : i32
    return %arg0, %c0_i32, %c0_i32_0 : i32, i32, i32
  }
}

</mosaic_0001>

<bundles_post_ra>
// kernel: tpu_custom_call.1
= control target key start
LH: loop header
LB: loop body
LE: loop exit
PB: predicated region body
PF: predicated region fallthrough
CT: control target
= control target key end

     0   :  { %10 = vsyncpa [#allocation3], 0  ;;  %s990_s0 = inlined_call_operand.hbm [shape: f32[2,16,256], index: 0, kind: input, shape index: {}]   ;;  %s991_s1 = inlined_call_operand.vmem [shape: f32[16,8], index: 1, kind: input, shape index: {}]   ;;  %s992_s2 = inlined_call_operand.vmem [shape: f32[1,8], index: 2, kind: input, shape index: {}]   ;;  %s993_s3 = inlined_call_operand.vmem [shape: f32[8,16], index: 3, kind: input, shape index: {}]   ;;  %s994_s4 = inlined_call_operand.vmem [shape: f32[1,16], index: 4, kind: input, shape index: {}]   ;;  %s995_s5 = inlined_call_operand.hbm [shape: f32[2,16,256], index: 5, kind: output, shape index: {}]  }
   0x1   :  { %12 = vsyncpa [#allocation3 + $0x1], 0 }
   0x2   :  { %13 = vsyncpa [#allocation4], 0 }
   0x3   :  { %15 = vsyncpa [#allocation4 + $0x1], 0  ;;  %s793_s18 = smov 0   ;;  %s795_s19 = smov 0  }
   0x4   :  { %s797_s20 = smov 0   ;;  %s799_s21 = smov 0  }
   0x5 LB: > { %s814_s22 = sadd.s32 4294967295, %s752_s21   ;;  %s554_s23 = sadd.s32 4294967294, %s752_s21   ;;  %s752_s21 = sphi %s799_s21, %s1008_s21   ;;  %s748_s20 = sphi %s797_s20, %s1007_s20   ;;  %s744_s19 = sphi %s795_s19, %s1006_s19   ;;  %s740_s18 = sphi %s793_s18, %s1005_s18  }
   0x6   : > { %s818_s24 = sadd.s32 1, %s752_s21   ;;  %s28_s25 = sadd.s32 1, %s748_s20 }
   0x7   : > { %s25_s26 = ssub.s32 %s752_s21, %s818_s24  ;;  %p35_p0 = scmp.ne.s32.totalorder %s748_s20, %s744_s19 }
   0x8   : > { %p26_p1 = scmp.eq.s32.totalorder %s25_s26, 0  ;;  %p36_p2 = scmp.eq.s32.totalorder %s752_s21, 0 }
   0x9   : > { %p41_p3 = scmp.ne.s32.totalorder %s744_s19, %s740_s18  ;;  %p42_p4 = scmp.eq.s32.totalorder %s814_s22, 0 }
   0xa   : > { %s830_s27 = scalar_select %p26_p1, %s748_s20, %s28_s25  }
   0xb   : > { %p832_p5 = por %p36_p2, %p35_p0  ;;  %p836_p6 = por %p42_p4, %p41_p3 }
   0xc   : > { %p149_p7 = scmp.eq.s32.totalorder %s814_s22, 1  ;;  %p155_p8 = scmp.eq.s32.totalorder %s554_s23, 1 }
   0xd   : > { %p605_p10 = scmp.lt.s32.totalorder %s752_s21, 2  ;;  %s187_s7 = sand.u32 1, %s748_s20  }
   0xe   : > { %p843_p11 = por %p149_p7, %p35_p0  ;;  %p847_p12 = por %p155_p8, %p41_p3 }
   0xf   : > { %s571_s8 = sshll.u32 %s752_s21, 9  ;;  %s557_s9 = sshll.u32 %s187_s7, 5 }
  0x10   : > { %s999_s30 = scalar_select %p843_p11, 1, 0 }
  0x11   : > { %s1000_s6 = scalar_select %p847_p12, 1, 0 }
  0x12   : > { %s856_s12 = scalar_lea.hbm %s990_s0, %s571_s8  ;;  %s191_s13 = scalar_lea.vmem [#allocation2], %s557_s9 }
  0x13   : > { %s198_s14 = sshll.u32 %s191_s13, 4  ;;  %p860_p13 = pnand %p605_p10, %p832_p5  ;;  %s864_s14 = int_to_ptr.vmem [resolvable:$true] %s198_s14 }
  0x14   : > { %s866_s16 = scalar_lea.sflag [#allocation3], %s187_s7  ;;  %s656_s17 = scalar_lea.hbm %s856_s12, 512 }
  0x15   : > { %p657_p0 = scmp.ne.s32.totalorder %s856_s12, %s656_s17  ;;  %p658_p1 = pneg %p860_p13 }
  0x16   : > { %s661_s26 = scalar_lea.hbm %s990_s0, 1024  ;;  %p662_p4 = scmp.lt.u32.totalorder %s856_s12, %s990_s0 }
  0x17   : > { %p659_p2 = pnand %p658_p1, %p657_p0  ;;  %p663_p5 = scmp.lt.u32.totalorder %s661_s26, %s656_s17 }
  0x18   : > { %p665_p8 = scmp.lt.u32.totalorder %s656_s17, %s856_s12 }
  0x19   : > { %p660_p3 = pneg %p659_p2  ;;  %p664_p7 = por %p663_p5, %p662_p4 }
  0x1b   : > { %p666_p10 = por %p665_p8, %p664_p7 }
  0x1d   : > { %p667_p9 = pnand %p666_p10, %p660_p3 }
  0x1f   : > { %670 = shalt.err (!%p667_p9)
}
  0x20   : > { %s671_s7 = scalar_lea.vmem %s864_s14, 512  ;;  %s754_s9 = smov [#allocation2]  }
  0x21   : > { %p672_p0 = scmp.ne.s32.totalorder %s864_s14, %s671_s7  ;;  %s676_s10 = sshll.u32 %s754_s9, 4  ;;  %s677_s10 = int_to_ptr.vmem [resolvable:$false] %s676_s10 }
  0x22   : > { %s678_s11 = scalar_lea.vmem %s677_s10, 1024  ;;  %p679_p11 = scmp.lt.s32.totalorder %s864_s14, %s677_s10 }
  0x23   : > { %p674_p2 = pnand %p672_p0, %p658_p1  ;;  %p680_p4 = scmp.lt.s32.totalorder %s678_s11, %s671_s7 }
  0x25   : > { %p675_p12 = pneg %p674_p2  ;;  %p681_p5 = por %p680_p4, %p679_p11 }
  0x27   : > { %p682_p7 = pnand %p681_p5, %p675_p12 }
  0x29   : > { %685 = shalt.err (!%p682_p7)
}
  0x2a   : > { %s755_s13 = smov 256   ;;  %s756_s17 = smov 16  }
  0x2b   : > { %600 = dma.hbm_to_vmem [thread:$0]  (!%p860_p13), %s856_s12, 512, %s864_s14, %s866_s16, %s755_s13, %s755_s13, %s756_s17  }
  0x2c   : > { %p560_p9 = scmp.ge.s32.totalorder %s752_s21, 1  ;;  %p206_p1 = scmp.lt.s32.totalorder %s752_s21, 3 }
  0x2e   : > { %p207_p3 = pnand %p560_p9, %p206_p1 }
  0x2f   : > { %s897_s23 = sand.u32 (!%p207_p3), 1, %s744_s19  }
  0x30   : > { %210 = sbr.rel (%p207_p3) target bundleno = 851 (0x353), region = 40  ;;  %s561_s25 = sshll.u32 (!%p207_p3), %s897_s23, 5 }
  0x31   : > { %s213_s26 = scalar_lea.sflag (!%p207_p3), [#allocation3], %s897_s23  ;;  %s216_s28 = scalar_lea.vmem (!%p207_p3), [#allocation2], %s561_s25 }
  0x37   : > { %731 = dma.done.wait (%p836_p6), %s213_s26, 512  }
  0x38   : > { %733 = vsyncadd (%p836_p6), %s213_s26, 4294966784  ;;  %v907_v0 = vld [vmem:[%s216_s28] sm:$0xff]  ;;  %v909_v1 = vld [vmem:[%s216_s28 + $0x8] sm:$0xff]  ;;  %v757_v9 = vmov 0.0|0.0   ;;  %vm758_vm0 = vmmov 0   ;;  %v759_v10 = vmov 0.0   ;;  %v260_v11 = vlaneseq }
  0x39   : > { %v911_v2 = vld [vmem:[%s216_s28 + $0x10] sm:$0xff]  ;;  %v247_v3 = vadd.f32 %v909_v1, %v907_v0  ;;  %v915_v4 = vld [vmem:[%s216_s28 + $0x18] sm:$0xff]  ;;  %v255_v6 = vld [vmem:[%s991_s1] sm:$0xff]  ;;  %590 = vmatprep.subr.bf16.mxu0 %v757_v9  ;;  %582 = vmatprep.mubr.msk.f32.mxu0 %vm758_vm0, %v759_v10  ;;  %vm271_vm1 = vcmask 130112   ;;  %vm273_vm2 = vcmask 130048   ;;  %vm368_vm5 = vcmask 64512  }
  0x3a   : > { %v250_v5 = vadd.f32 %v915_v4, %v911_v2  ;;  %v256_v7 = vld [vmem:[%s991_s1 + $0x8] sm:$0xff]  ;;  %585 = vmatprep.subr.mxu1 %v759_v10  ;;  %587 = vmatprep.mubr.msk.f32.mxu1 %vm758_vm0, %v759_v10  ;;  %v261_v12 = vand.u32 127, %v260_v11  ;;  %v263_v13 = vshrl.u32 %v260_v11, 7  ;;  %v366_v24 = vld [vmem:[%s993_s3] sm:$0xff]  ;;  %s242_s13 = scalar_lea.vmem [#allocation5], %s561_s25  ;;  %s572_s26 = sshll.u32 %s814_s22, 9 }
  0x3b   : > { %248 = vadd.xlane.f32.xlu0 %v247_v3  ;;  %v591_v8 = vpack.c.bf16 %v256_v7, %v255_v6  ;;  %586 = vmatpush3.msra.mxu1 %v366_v24  ;;  %v257_v25 = vld [vmem:[%s992_s2] sm:$0x1]  ;;  %s481_s17 = sshll.u32 %s242_s13, 4  ;;  %s944_s25 = scalar_lea.hbm %s995_s5, %s572_s26  ;;  %s939_s17 = int_to_ptr.vmem [resolvable:$true] %s481_s17 }
  0x3c   : > { %v266_v14 = vadd.s32 4294967288, %v261_v12  ;;  %v264_v16 = vsub.s32 %v261_v12, %v263_v13  ;;  %v367_v46 = vld [vmem:[%s994_s4] sm:$0x1]  ;;  %v450_v53 = vsub.s32 0, %v263_v13  ;;  %s468_s22 = scalar_lea.sflag [#allocation4], %s897_s23  ;;  %s686_s14 = scalar_lea.vmem %s939_s17, 512 }
  0x3d   : > { %592 = vmatpush3.bf16.msra.mxu0 %v591_v8  ;;  %p687_p6 = scmp.ne.s32.totalorder %s939_s17, %s686_s14  ;;  %p1002_p11 = scmp.ne.s32.totalorder %s999_s30, 0 }
  0x3e   : > { %v269_v18 = vsub.s32 %v266_v14, %v263_v13  ;;  %s760_s29 = smov [#allocation5]  }
  0x3f   : > { %251 = vadd.xlane.f32.xlu0 %v250_v5  ;;  %p688_p12 = pnand %p687_p6, %p1002_p11  ;;  %s690_s15 = sshll.u32 %s760_s29, 4  ;;  %s691_s15 = int_to_ptr.vmem [resolvable:$false] %s690_s15 }
  0x40   : > { %s692_s16 = scalar_lea.vmem %s691_s15, 1024  ;;  %p693_p8 = scmp.lt.s32.totalorder %s939_s17, %s691_s15 }
  0x41   : > { %p689_p13 = pneg %p688_p12  ;;  %p694_p10 = scmp.lt.s32.totalorder %s692_s16, %s686_s14 }
  0x43   : > { %p695_p0 = por %p694_p10, %p693_p8 }
  0x45   : > { %p696_p2 = pnand %p695_p0, %p689_p13 }
  0xc8   : > { %v249_v15 = vpop.xlane.xlu0 %248 }
  0xc9   : > { %v253_v17 = vmul.f32 0.00390625, %v249_v15 }
  0xcb   : > { %v265_v21 = vrot.slane %v253_v17, %v264_v16 }
  0xcc   : > { %v252_v19 = vpop.xlane.xlu0 %251 }
  0xcd   : > { %v254_v20 = vmul.f32 0.00390625, %v252_v19 }
  0xcf   : > { %v270_v22 = vrot.slane %v254_v20, %v269_v18 }
  0xd1   : > { %v272_v23 = vsel %vm271_vm1, %v270_v22, %v265_v21 }
  0xd2   : > { %583 = vmatmul.mubr.msk.f32.vlgmr.msra.gmra.mrb[0].mxu0 %vm273_vm2, %v272_v23 }
 0x1a5   : > { %v342_v26 = vpop.f32.mrb[0].mxu0 }
 0x1a6   : > { %v343_v27 = vadd.f32 %v342_v26, %v257_v25  ;;  %v584_v28 = vpop.f32.mrb[1].mxu0 }
 0x1a8   : > { %v349_v29 = vand.u32 2147483647, %v343_v27  ;;  %v346_v40 = vmax.f32 %v343_v27, 0.0  ;;  %vm347_vm4 = vcmp.ne.f32.partialorder %v343_v27, %v343_v27 }
 0x1aa   : > { %v350_v30 = vsub.f32 0.0, %v349_v29 }
 0x1ac   : > { %v351_v31 = vmul.f32 1.442695, %v350_v30 }
 0x1ae   : > { %646 = vpow2.f32 %v351_v31 }
 0x1b8   : > { %v647_v32 = vpop.eup %646 }
 0x1b9   : > { %v353_v33 = vadd.f32 1.0, %v647_v32  ;;  %v356_v34 = vmul.f32 -0.5, %v647_v32  ;;  %v359_v36 = vand.u32 2147483647, %v647_v32 }
 0x1bb   : > { %648 = vlog2.f32 %v353_v33  ;;  %v357_v35 = vadd.f32 1.0, %v356_v34  ;;  %vm360_vm3 = vcmp.lt.f32.partialorder %v359_v36, 0.0004427343 }
 0x1bd   : > { %v358_v39 = vmul.f32 %v647_v32, %v357_v35 }
 0x1c5   : > { %v649_v37 = vpop.eup %648 }
 0x1c6   : > { %v355_v38 = vmul.f32 0.6931472, %v649_v37 }
 0x1c8   : > { %v361_v41 = vsel %vm360_vm3, %v358_v39, %v355_v38 }
 0x1c9   : > { %v362_v42 = vadd.f32 %v361_v41, %v346_v40 }
 0x1cb   : > { %v363_v43 = vsel %vm347_vm4, %v343_v27, %v362_v42 }
 0x1cc   : > { %650 = vtanh.f32 %v363_v43 }
 0x1d6   : > { %v651_v44 = vpop.eup %650 }
 0x1d7   : > { %v365_v45 = vmul.f32 %v651_v44, %v343_v27 }
 0x1d9   : > { %588 = vmatmul.mubr.msk.f32.vlgmr.msra.gmra.mrb[0].mxu1 %vm368_vm5, %v365_v45 }
 0x2ac   : > { %v438_v47 = vpop.f32.mrb[0].mxu1 }
 0x2ad   : > { %v439_v48 = vadd.f32 %v438_v47, %v367_v46  ;;  %v589_v49 = vpop.f32.mrb[1].mxu1 }
 0x2af   : > { %v565_v50 = vmul.f32 -1.442695, %v439_v48 }
 0x2b1   : > { %652 = vpow2.f32 %v565_v50 }
 0x2bb   : > { %v653_v51 = vpop.eup %652 }
 0x2bc   : > { %v445_v52 = vadd.f32 1.0, %v653_v51 }
 0x2be   : > { %654 = vrcp.f32 %v445_v52 }
 0x2c8   : > { %v655_v54 = vpop.eup %654 }
 0x2c9   : > { %v451_v55 = vrot.slane %v655_v54, %v450_v53 }
 0x2cb   : > { %453 = vbcast.lane.b32.xlu1 %v451_v55, 256 }
 0x2cf   : > { %457 = vbcast.lane.b32.xlu1 %v451_v55, 264 }
 0x33d   : > { %v454_v56 = vpop.permute.xlu1 %453 }
 0x33e   : > { %v459_v57 = vmul.f32 %v454_v56, %v907_v0  ;;  %v460_v58 = vmul.f32 %v454_v56, %v909_v1 }
 0x340   : > { %463 = vst [vmem:[%s242_s13] sm:$0xff] %v459_v57  ;;  %464 = vst [vmem:[%s242_s13 + $0x8] sm:$0xff] %v460_v58 }
 0x341   : > { %v458_v59 = vpop.permute.xlu1 %457 }
 0x342   : > { %v461_v60 = vmul.f32 %v458_v59, %v911_v2  ;;  %v462_v61 = vmul.f32 %v458_v59, %v915_v4 }
 0x344   : > { %465 = vst [vmem:[%s242_s13 + $0x10] sm:$0xff] %v461_v60  ;;  %466 = vst [vmem:[%s242_s13 + $0x18] sm:$0xff] %v462_v61 }
 0x345   : > { %699 = shalt.err (!%p696_p2)
}
 0x346   : > { %s700_s8 = scalar_lea.hbm %s944_s25, 512  ;;  %s704_s10 = scalar_lea.hbm %s995_s5, 1024 }
 0x347   : > { %p701_p4 = scmp.ne.s32.totalorder %s944_s25, %s700_s8  ;;  %p705_p9 = scmp.lt.u32.totalorder %s944_s25, %s995_s5 }
 0x348   : > { %p706_p1 = scmp.lt.u32.totalorder %s704_s10, %s700_s8  ;;  %p708_p6 = scmp.lt.u32.totalorder %s700_s8, %s944_s25 }
 0x349   : > { %p702_p5 = pnand %p701_p4, %p1002_p11 }
 0x34a   : > { %p707_p3 = por %p706_p1, %p705_p9 }
 0x34b   : > { %p703_p7 = pneg %p702_p5 }
 0x34c   : > { %p709_p12 = por %p708_p6, %p707_p3 }
 0x34e   : > { %p710_p13 = pnand %p709_p12, %p703_p7 }
 0x350   : > { %713 = shalt.err (!%p710_p13)
}
 0x351   : > { %s761_s26 = smov 256   ;;  %s762_s28 = smov 16  }
 0x352   : > { %595 = dma.vmem_to_hbm [thread:$0]  (%p1002_p11), %s939_s17, 512, %s944_s25, %s468_s22, %s761_s26, %s761_s26, %s762_s28  }
 0x353 PF: > { %s496_s12 = sand.u32 1, %s740_s18   ;;  %p1003_p8 = scmp.ne.s32.totalorder %s1000_s6, 0 }
 0x354   : > { %p1004_p10 = scmp.ge.s32.totalorder %s752_s21, 2  ;;  %s497_s14 = scalar_lea.sflag [#allocation4], %s496_s12 }
 0x356   : > { %p602_p0 = pnand %p1004_p10, %p1003_p8 }
 0x358   : > { %735 = dma.done.wait (!%p602_p0), %s497_s14, 512  }
 0x359   : > { %737 = vsyncadd (!%p602_p0), %s497_s14, 4294966784  ;;  %p18_p2 = scmp.ge.s32.totalorder %s818_s24, 4   ;;  %s1005_s18 = smov %s744_s19 }
 0x35a   : > { %s1006_s19 = smov %s748_s20  ;;  %s1007_s20 = smov %s830_s27 }
 0x35b   : > { %s1008_s21 = smov %s818_s24  ;;  %20 = sbr.rel (!%p18_p2) target bundleno = 5 (0x5), region = 85 }
 0x362   :  { %502 = vsyncpa [#allocation3], 1 }
 0x363   :  { %504 = vsyncpa [#allocation3 + $0x1], 1 }
 0x364   :  { %505 = vsyncpa [#allocation4], 1 }
 0x365   :  { %507 = vsyncpa [#allocation4 + $0x1], 1 }

</bundles_post_ra>
